<compile_context>
chip_gen: v7x
topology: tpu7x:2x2x1
jax: 0.10.0
libtpu: 0.0.40
codegen_flags: <defaults>
</compile_context>

<pallas_src>
import jax
import jax.numpy as jnp
from jax.experimental import pallas as pl
from jax.experimental.pallas import tpu as pltpu


def _linear_kernel(w_ref, b_ref, x_ref, o_ref):
    # w_ref: SMEM (3,) f32 scalar-prefetch, b_ref: SMEM (1,) f32 scalar-prefetch
    # x_ref: VMEM (3, TILE_N) f32,          o_ref: VMEM (1, TILE_N) f32
    w0 = w_ref[0]
    w1 = w_ref[1]
    w2 = w_ref[2]
    b = b_ref[0]
    # Pure VPU: three vector-scalar FMAs + bias broadcast, lane-dense output.
    o_ref[...] = (x_ref[0:1, :] * w0
                  + x_ref[1:2, :] * w1
                  + x_ref[2:3, :] * w2
                  + b)


def multivariate_linear_regression(x, weight, bias, *, tile_n=512):
    """x: (N, 3) f32, weight: (1, 3) f32 (PyTorch layout), bias: (1,) f32."""
    n, in_f = x.shape
    out_f = weight.shape[0]
    assert in_f == 3 and out_f == 1

    # --- wrapper-side relayout (glue, outside the kernel) -------------------
    # Batch -> lanes: (N, 3) -> (3, N_pad), N_pad a multiple of tile_n.
    n_pad = -(-n // tile_n) * tile_n
    x_t = jnp.pad(x.astype(jnp.float32).T, ((0, 0), (0, n_pad - n)))  # (3, N_pad)
    w_flat = weight.astype(jnp.float32).reshape(in_f)                 # (3,) -> SMEM
    b_flat = bias.astype(jnp.float32).reshape(out_f)                  # (1,) -> SMEM

    grid = (n_pad // tile_n,)

    out = pl.pallas_call(
        _linear_kernel,
        out_shape=jax.ShapeDtypeStruct((out_f, n_pad), jnp.float32),
        grid_spec=pltpu.PrefetchScalarGridSpec(
            num_scalar_prefetch=2,          # weight + bias live in SMEM
            grid=grid,
            in_specs=[
                # x: full 3-row extent, lane-dense tile of the batch axis.
                pl.BlockSpec((in_f, tile_n), lambda i, w, b: (0, i)),
            ],
            out_specs=pl.BlockSpec((out_f, tile_n), lambda i, w, b: (0, i)),
        ),
        compiler_params=pltpu.CompilerParams(
            dimension_semantics=("parallel",),   # shard batch across TCs on v7x
            vmem_limit_bytes=64 * 1024 * 1024,   # tiny tiles; explicit limit for v7x
        ),
        cost_estimate=pl.CostEstimate(
            flops=6 * n,             # 3 mul + 2 add + bias add per row
            transcendentals=0,
            bytes_accessed=16 * n,   # 3 f32 loads + 1 f32 store per row
        ),
    )(w_flat, b_flat, x_t)

    # Back to the PyTorch-facing layout (glue).
    return out[:, :n].T   # (N, 1)


if __name__ == "__main__":
    key = jax.random.PRNGKey(0)
    kx, kw, kb = jax.random.split(key, 3)

    # Small example input consistent with nn.Linear(3, 1): batch=8, features=3
    x = jax.random.normal(kx, (8, 3), dtype=jnp.float32)

    # Deterministic parameter init mimicking PyTorch's U(-1/sqrt(fan_in), 1/sqrt(fan_in))
    bound = 1.0 / jnp.sqrt(3.0)
    weight = jax.random.uniform(kw, (1, 3), minval=-bound, maxval=bound,
                                dtype=jnp.float32)
    bias = jax.random.uniform(kb, (1,), minval=-bound, maxval=bound,
                              dtype=jnp.float32)

    out = multivariate_linear_regression(x, weight, bias)
    out = jax.block_until_ready(out)

    # Reference check in plain JAX
    ref = x @ weight.T + bias
    assert out.shape == (8, 1)
    assert jnp.allclose(out, ref, atol=1e-5, rtol=1e-5)

    print("KERNEL_OK")
</pallas_src>

<mosaic_0001>
module attributes {stable_mosaic.version = 11 : i64} {
  func.func @_linear_kernel(%arg0: i32, %arg1: memref<3xf32, #tpu.memory_space<smem>>, %arg2: memref<1xf32, #tpu.memory_space<smem>>, %arg3: memref<3x512xf32, #tpu.memory_space<vmem>>, %arg4: memref<1x512xf32, #tpu.memory_space<vmem>>) attributes {dimension_semantics = [#tpu.dimension_semantics<parallel>], iteration_bounds = array<i64: 1>, scalar_prefetch = 2 : i64, scratch_operands = 0 : i64, tpu.core_type = #tpu.core_type<tc>, window_params = [{transform_indices = @transform_0, window_bounds = array<i64: 3, 512>}, {transform_indices = @transform_1, window_bounds = array<i64: 1, 512>}]} {
    %c0 = arith.constant 0 : index
    %0 = memref.load %arg1[%c0] : memref<3xf32, #tpu.memory_space<smem>>
    %c1 = arith.constant 1 : index
    %1 = memref.load %arg1[%c1] : memref<3xf32, #tpu.memory_space<smem>>
    %c2 = arith.constant 2 : index
    %2 = memref.load %arg1[%c2] : memref<3xf32, #tpu.memory_space<smem>>
    %c0_0 = arith.constant 0 : index
    %3 = memref.load %arg2[%c0_0] : memref<1xf32, #tpu.memory_space<smem>>
    %c0_1 = arith.constant 0 : index
    %c0_2 = arith.constant 0 : index
    %4 = vector.load %arg3[%c0_1, %c0_2] : memref<3x512xf32, #tpu.memory_space<vmem>>, vector<1x512xf32>
    %5 = vector.broadcast %0 : f32 to vector<1x512xf32>
    %6 = arith.mulf %4, %5 : vector<1x512xf32>
    %c1_3 = arith.constant 1 : index
    %c0_4 = arith.constant 0 : index
    %7 = vector.load %arg3[%c1_3, %c0_4] : memref<3x512xf32, #tpu.memory_space<vmem>>, vector<1x512xf32>
    %8 = vector.broadcast %1 : f32 to vector<1x512xf32>
    %9 = arith.mulf %7, %8 : vector<1x512xf32>
    %10 = arith.addf %6, %9 : vector<1x512xf32>
    %c2_5 = arith.constant 2 : index
    %c0_6 = arith.constant 0 : index
    %11 = vector.load %arg3[%c2_5, %c0_6] : memref<3x512xf32, #tpu.memory_space<vmem>>, vector<1x512xf32>
    %12 = vector.broadcast %2 : f32 to vector<1x512xf32>
    %13 = arith.mulf %11, %12 : vector<1x512xf32>
    %14 = arith.addf %10, %13 : vector<1x512xf32>
    %15 = vector.broadcast %3 : f32 to vector<1x512xf32>
    %16 = arith.addf %14, %15 : vector<1x512xf32>
    %c0_7 = arith.constant 0 : index
    %c0_8 = arith.constant 0 : index
    %17 = vector.load %arg4[%c0_7, %c0_8] : memref<1x512xf32, #tpu.memory_space<vmem>>, vector<1x512xf32>
    tpu.vector_store %arg4[%c0_7, %c0_8], %16 {strides = array<i32>} : memref<1x512xf32, #tpu.memory_space<vmem>>, vector<1x512xf32>,
    return
  }
  func.func @transform_0(%arg0: i32, %arg1: memref<3xf32, #tpu.memory_space<smem>>, %arg2: memref<1xf32, #tpu.memory_space<smem>>) -> (i32, i32) {
    %c0_i32 = arith.constant 0 : i32
    %c0_i32_0 = arith.constant 0 : i32
    return %c0_i32, %arg0 : i32, i32
  }
  func.func @transform_1(%arg0: i32, %arg1: memref<3xf32, #tpu.memory_space<smem>>, %arg2: memref<1xf32, #tpu.memory_space<smem>>) -> (i32, i32) {
    %c0_i32 = arith.constant 0 : i32
    %c0_i32_0 = arith.constant 0 : i32
    return %c0_i32, %arg0 : i32, i32
  }
}

</mosaic_0001>

<bundles_post_ra>
// kernel: tpu_custom_call.1
= control target key start
LH: loop header
LB: loop body
LE: loop exit
PB: predicated region body
PF: predicated region fallthrough
CT: control target
= control target key end

     0   :  { %s194_s0 = inlined_call_operand.hbm [shape: f32[3], index: 0, kind: input, shape index: {}]   ;;  %s195_s1 = inlined_call_operand.<no memory space> [shape: f32[1], index: 1, kind: input, shape index: {}]   ;;  %s196_s2 = inlined_call_operand.hbm [shape: f32[3,512], index: 2, kind: input, shape index: {}]   ;;  %s197_s3 = inlined_call_operand.hbm [shape: f32[1,512], index: 3, kind: output, shape index: {}]  }
   0x1   :  { %s72_s14 = scalar_lea.hbm %s194_s0, 16 }
   0x2   :  { %p73_p0 = scmp.ne.s32.totalorder %s194_s0, %s72_s14  ;;  %p76_p1 = scmp.lt.u32.totalorder %s72_s14, %s194_s0 }
   0x4   :  { %p78_p2 = pnand %p76_p1, %p73_p0 }
   0x6   :  { %81 = shalt.err (!%p78_p2)  }
   0x7   :  { %s132_s19 = smov [#allocation3]  }
   0x8   :  { %9 = dma.hbm_to_smem %s194_s0, 16, %s132_s19, [#allocation2] }
   0x9   :  { %126 = dma.done.wait [#allocation2], 16 }
   0xa   :  { %127 = vsyncadd [#allocation2], 4294967280 }
   0xb   :  { %12 = sfence }
   0xc   :  { %13 = vsyncpa [#allocation6], 0 }
   0xd   :  { %14 = vsyncpa [#allocation7], 0  ;;  %s133_s22 = smov [#allocation5]   ;;  %s82_s26 = scalar_lea.hbm %s196_s2, 256 }
   0xe   :  { %s21_s23 = sshll.u32 %s133_s22, 4  ;;  %p83_p3 = scmp.ne.s32.totalorder %s196_s2, %s82_s26  ;;  %s22_s23 = int_to_ptr.vmem [resolvable:$true] %s21_s23 }
   0xf   :  { %p86_p4 = scmp.lt.u32.totalorder %s82_s26, %s196_s2 }
  0x11   :  { %p88_p5 = pnand %p86_p4, %p83_p3 }
  0x13   :  { %91 = shalt.err (!%p88_p5)
}
  0x14   :  { %s92_s0 = scalar_lea.vmem %s22_s23, 256  ;;  %p97_p7 = scmp.lt.s32.totalorder %s22_s23, %s22_s23 }
  0x15   :  { %p93_p6 = scmp.ne.s32.totalorder %s22_s23, %s92_s0  ;;  %p98_p8 = scmp.lt.s32.totalorder %s92_s0, %s92_s0 }
  0x17   :  { %p99_p9 = por %p98_p8, %p97_p7 }
  0x19   :  { %p100_p10 = pnand %p99_p9, %p93_p6 }
  0x1b   :  { %103 = shalt.err (!%p100_p10)
}
  0x1c   :  { %24 = dma.hbm_to_vmem [thread:$0]  %s196_s2, 256, %s22_s23, [#allocation6]  }
  0x1d   :  { %128 = dma.done.wait [#allocation6], 256  }
  0x1e   :  { %129 = vsyncadd [#allocation6], 4294967040  ;;  %s28_s6 = sld [smem:[#allocation3]]  ;;  %s67_s7 = sld [smem:[#allocation3 + $0x1]]  ;;  %v47_v9 = vlaneseq  ;;  %v45_v11 = vstv %s195_s1 }
  0x1f   :  { %s68_s8 = sld [smem:[#allocation3 + $0x2]]  ;;  %v32_v0 = vld [vmem:[#allocation5] ss:$4 sm:$0xf]  ;;  %s134_s2 = smov [#allocation8]  }
  0x20   :  { %v36_v2 = vld [vmem:[#allocation5 + $0x1] ss:$4 sm:$0xf]  ;;  %v41_v6 = vld [vmem:[#allocation5 + $0x2] ss:$4 sm:$0xf] }
  0x21   :  { %s58_s11 = sshll.u32 %s134_s2, 4  ;;  %vm49_vm0 = vcmp.lt.s32.totalorder %v47_v9, 512  ;;  %s59_s11 = int_to_ptr.vmem [resolvable:$true] %s58_s11 }
  0x22   :  { %s104_s12 = scalar_lea.vmem %s59_s11, 64  ;;  %p109_p12 = scmp.lt.s32.totalorder %s59_s11, %s59_s11 }
  0x23   :  { %p105_p11 = scmp.ne.s32.totalorder %s59_s11, %s104_s12  ;;  %p110_p13 = scmp.lt.s32.totalorder %s104_s12, %s104_s12 }
  0x24   :  { %v33_v1 = vstv %s28_s6  ;;  %v37_v3 = vstv %s67_s7 }
  0x25   :  { %v34_v4 = vmul.f32 %v33_v1, %v32_v0  ;;  %v38_v5 = vmul.f32 %v37_v3, %v36_v2  ;;  %v42_v7 = vstv %s68_s8  ;;  %p111_p0 = por %p110_p13, %p109_p12 }
  0x26   :  { %v43_v8 = vmul.f32 %v42_v7, %v41_v6 }
  0x27   :  { %v39_v10 = vadd.f32 %v38_v5, %v34_v4  ;;  %p112_p1 = pnand %p111_p0, %p105_p11 }
  0x29   :  { %v44_v12 = vadd.f32 %v43_v8, %v39_v10 }
  0x2b   :  { %v46_v13 = vadd.f32 %v45_v11, %v44_v12 }
  0x2d   :  { %51 = vst.msk [vmem:[#allocation8] sm:$0xf] %vm49_vm0, %v46_v13 }
  0x2e   :  { %115 = shalt.err (!%p112_p1)
}
  0x2f   :  { %s116_s15 = scalar_lea.hbm %s197_s3, 64 }
  0x30   :  { %p117_p2 = scmp.ne.s32.totalorder %s197_s3, %s116_s15  ;;  %p120_p3 = scmp.lt.u32.totalorder %s116_s15, %s197_s3 }
  0x32   :  { %p122_p4 = pnand %p120_p3, %p117_p2 }
  0x34   :  { %125 = shalt.err (!%p122_p4)
}
  0x35   :  { %61 = dma.vmem_to_hbm [thread:$0]  %s59_s11, 64, %s197_s3, [#allocation7]  }
  0x36   :  { %130 = dma.done.wait [#allocation7], 64  }
  0x37   :  { %131 = vsyncadd [#allocation7], 4294967232 }
  0x38   :  { %65 = vsyncpa [#allocation6], 1 }
  0x39   :  { %66 = vsyncpa [#allocation7], 1 }

</bundles_post_ra>
